<compile_context>
chip_gen: v6e
topology: v6e:2x2x1
jax: 0.10.0
libtpu: 0.0.40
codegen_flags: <defaults>
</compile_context>

<pallas_src>
import jax
import jax.numpy as jnp
from jax import lax
from jax.experimental import pallas as pl
from jax.experimental.pallas import tpu as pltpu


def _mil_attention_kernel(x_ref, w1t_ref, b1_ref, w2_ref, b2_ref, out_ref):
    """One tile of tokens per grid step.

    x_ref  : (tile_m, n_in)      token tile, streamed from HBM
    w1t_ref: (n_latent, n_in)    linear1 weight, torch layout (resident)
    b1_ref : (n_latent, 1)       linear1 bias as a column (broadcast over lanes)
    w2_ref : (1, n_latent)       linear2 weight
    b2_ref : (1, 1)              linear2 bias
    out_ref: (1, tile_m)         scores, tokens on the 128-lane axis
    """
    # linear1, computed transposed: h_t = w1_torch @ x^T -> (n_latent, tile_m).
    # MXU matmul with f32 accumulation; result is lane-dense over tokens.
    h_t = lax.dot_general(
        w1t_ref[...], x_ref[...],
        dimension_numbers=(((1,), (1,)), ((), ())),
        preferred_element_type=jnp.float32)              # (n_latent, tile_m)

    # bias add on the VPU, tanh on the EUP — fully occupied vregs.
    h_t = jnp.tanh(h_t + b1_ref[...])

    # linear2: (1, n_latent) @ (n_latent, tile_m) -> (1, tile_m), no transpose.
    s = jnp.dot(w2_ref[...], h_t,
                preferred_element_type=jnp.float32) + b2_ref[...]

    out_ref[...] = s.astype(out_ref.dtype)               # lane-dense store


def mil_attention_pallas(x_flat, w1_t, b1_col, w2_row, b2, *, tile_m=4096):
    """x_flat: (M, n_in) float32. Returns scores of shape (M,)."""
    M, n_in = x_flat.shape
    n_latent = w1_t.shape[0]

    # Clamp the tile to the (128-rounded) problem size so tiny inputs don't
    # allocate oversized blocks; keep it a multiple of 128 for lane-dense
    # output stores.  No jnp.pad of x: the tail block reads OOB rows whose
    # scores are sliced off below.
    m_rounded = ((M + 127) // 128) * 128
    tile_m = max(128, min(tile_m, m_rounded))
    n_tiles = pl.cdiv(M, tile_m)
    m_out = n_tiles * tile_m

    out = pl.pallas_call(
        _mil_attention_kernel,
        out_shape=jax.ShapeDtypeStruct((1, m_out), x_flat.dtype),
        grid_spec=pltpu.PrefetchScalarGridSpec(
            num_scalar_prefetch=0,
            grid=(n_tiles,),
            in_specs=[
                pl.BlockSpec((tile_m, n_in), lambda t: (t, 0)),     # x tile
                pl.BlockSpec((n_latent, n_in), lambda t: (0, 0)),   # w1 (torch)
                pl.BlockSpec((n_latent, 1), lambda t: (0, 0)),      # b1 col
                pl.BlockSpec((1, n_latent), lambda t: (0, 0)),      # w2 row
                pl.BlockSpec((1, 1), lambda t: (0, 0)),             # b2
            ],
            out_specs=pl.BlockSpec((1, tile_m), lambda t: (0, t)),
        ),
        compiler_params=pltpu.CompilerParams(
            dimension_semantics=("parallel",)),
    )(x_flat, w1_t, b1_col, w2_row, b2)

    return out.reshape(m_out)[:M]


def mil_attention_forward(x, params, *, tile_m=4096):
    """x: (..., n_in). Returns (..., 1) attention logits (matches nn.Module)."""
    lead = x.shape[:-1]
    n_in = x.shape[-1]
    x_flat = x.reshape(-1, n_in)
    scores = mil_attention_pallas(
        x_flat, params["w1_t"], params["b1_col"], params["w2_t"],
        params["b2_mat"], tile_m=tile_m)
    return scores.reshape(*lead, 1)


# ---------------------------------------------------------------------------
# parameter setup (deterministic, mimics nn.Linear default init)
# ---------------------------------------------------------------------------
def init_mil_attention_params(n_in, n_latent, key):
    k1, k2, k3, k4 = jax.random.split(key, 4)
    bound1 = 1.0 / (n_in ** 0.5)
    w1_t = jax.random.uniform(k1, (n_latent, n_in), jnp.float32, -bound1, bound1)
    b1 = jax.random.uniform(k2, (n_latent,), jnp.float32, -bound1, bound1)
    bound2 = 1.0 / (n_latent ** 0.5)
    w2_t = jax.random.uniform(k3, (1, n_latent), jnp.float32, -bound2, bound2)
    b2 = jax.random.uniform(k4, (1,), jnp.float32, -bound2, bound2)
    return {
        # kernel layout (torch-layout w1, column bias)
        "w1_t": w1_t,                       # (n_latent, n_in)
        "b1_col": b1.reshape(n_latent, 1),  # (n_latent, 1)
        "w2_t": w2_t,                       # (1, n_latent)
        "b2_mat": b2.reshape(1, 1),         # (1, 1)
        # vector copies for the reference
        "b1_vec": b1, "b2_vec": b2,
    }


# ---------------------------------------------------------------------------
# pure-JAX reference (matches the PyTorch forward) for validation
# ---------------------------------------------------------------------------
def mil_attention_forward_ref(x, params):
    h = jnp.tanh(x @ params["w1_t"].T + params["b1_vec"])
    return h @ params["w2_t"].T + params["b2_vec"]


if __name__ == "__main__":
    B, N, n_in = 2, 256, 32
    n_latent = (n_in + 1) // 2   # 16, matches the PyTorch default n_latent

    key = jax.random.PRNGKey(0)
    kx, kp = jax.random.split(key)
    x = jax.random.normal(kx, (B, N, n_in), jnp.float32)
    params = init_mil_attention_params(n_in, n_latent, kp)

    out = jax.block_until_ready(mil_attention_forward(x, params))
    ref = jax.block_until_ready(mil_attention_forward_ref(x, params))

    assert out.shape == (B, N, 1)
    assert jnp.allclose(out, ref, atol=1e-5, rtol=1e-5), "mismatch vs reference"

    print("KERNEL_OK")
</pallas_src>

<mosaic_0001>
module attributes {stable_mosaic.version = 11 : i64} {
  func.func @_mil_attention_kernel(%arg0: i32, %arg1: memref<512x32xf32, #tpu.memory_space<vmem>>, %arg2: memref<16x32xf32, #tpu.memory_space<vmem>>, %arg3: memref<16x1xf32, #tpu.memory_space<vmem>>, %arg4: memref<1x16xf32, #tpu.memory_space<vmem>>, %arg5: memref<1x1xf32, #tpu.memory_space<vmem>>, %arg6: memref<1x512xf32, #tpu.memory_space<vmem>>) attributes {dimension_semantics = [#tpu.dimension_semantics<parallel>], iteration_bounds = array<i64: 1>, scalar_prefetch = 0 : i64, scratch_operands = 0 : i64, tpu.core_type = #tpu.core_type<tc>, window_params = [{transform_indices = @transform_0, window_bounds = array<i64: 512, 32>}, {pipeline_mode = #tpu.pipeline_mode<synchronous>, transform_indices = @transform_1, window_bounds = array<i64: 16, 32>}, {pipeline_mode = #tpu.pipeline_mode<synchronous>, transform_indices = @transform_2, window_bounds = array<i64: 16, 1>}, {pipeline_mode = #tpu.pipeline_mode<synchronous>, transform_indices = @transform_3, window_bounds = array<i64: 1, 16>}, {pipeline_mode = #tpu.pipeline_mode<synchronous>, transform_indices = @transform_4, window_bounds = array<i64: 1, 1>}, {transform_indices = @transform_5, window_bounds = array<i64: 1, 512>}]} {
    %c0 = arith.constant 0 : index
    %c0_0 = arith.constant 0 : index
    %0 = vector.load %arg2[%c0, %c0_0] : memref<16x32xf32, #tpu.memory_space<vmem>>, vector<16x32xf32>
    %c0_1 = arith.constant 0 : index
    %c0_2 = arith.constant 0 : index
    %1 = vector.load %arg1[%c0_1, %c0_2] : memref<512x32xf32, #tpu.memory_space<vmem>>, vector<512x32xf32>
    %cst = arith.constant dense<0.000000e+00> : vector<16x512xf32>
    %2 = tpu.matmul %0, %1, %cst {dimension_numbers = #tpu.dot_dimension_numbers<[1], [1], [0], [0], [0, 0, 1, 0], [], []>} : vector<16x32xf32>, vector<512x32xf32>, vector<16x512xf32> -> vector<16x512xf32>
    %c0_3 = arith.constant 0 : index
    %c0_4 = arith.constant 0 : index
    %3 = vector.load %arg3[%c0_3, %c0_4] : memref<16x1xf32, #tpu.memory_space<vmem>>, vector<16x1xf32>
    %4 = vector.broadcast %3 : vector<16x1xf32> to vector<16x512xf32>
    %5 = arith.addf %2, %4 : vector<16x512xf32>
    %6 = math.tanh %5 : vector<16x512xf32>
    %c0_5 = arith.constant 0 : index
    %c0_6 = arith.constant 0 : index
    %7 = vector.load %arg4[%c0_5, %c0_6] : memref<1x16xf32, #tpu.memory_space<vmem>>, vector<1x16xf32>
    %cst_7 = arith.constant dense<0.000000e+00> : vector<1x512xf32>
    %8 = tpu.matmul %7, %6, %cst_7 {dimension_numbers = #tpu.dot_dimension_numbers<[1], [0], [0], [1], [0, 0, 1, 1], [], []>} : vector<1x16xf32>, vector<16x512xf32>, vector<1x512xf32> -> vector<1x512xf32>
    %c0_8 = arith.constant 0 : index
    %c0_9 = arith.constant 0 : index
    %9 = vector.load %arg5[%c0_8, %c0_9] : memref<1x1xf32, #tpu.memory_space<vmem>>, vector<1x1xf32>
    %10 = vector.broadcast %9 : vector<1x1xf32> to vector<1x512xf32>
    %11 = arith.addf %8, %10 : vector<1x512xf32>
    %c0_10 = arith.constant 0 : index
    %c0_11 = arith.constant 0 : index
    %12 = vector.load %arg6[%c0_10, %c0_11] : memref<1x512xf32, #tpu.memory_space<vmem>>, vector<1x512xf32>
    tpu.vector_store %arg6[%c0_10, %c0_11], %11 {strides = array<i32>} : memref<1x512xf32, #tpu.memory_space<vmem>>, vector<1x512xf32>,
    return
  }
  func.func @transform_0(%arg0: i32) -> (i32, i32) {
    %c0_i32 = arith.constant 0 : i32
    %c0_i32_0 = arith.constant 0 : i32
    return %arg0, %c0_i32 : i32, i32
  }
  func.func @transform_1(%arg0: i32) -> (i32, i32) {
    %c0_i32 = arith.constant 0 : i32
    %c0_i32_0 = arith.constant 0 : i32
    %c0_i32_1 = arith.constant 0 : i32
    return %c0_i32, %c0_i32_0 : i32, i32
  }
  func.func @transform_2(%arg0: i32) -> (i32, i32) {
    %c0_i32 = arith.constant 0 : i32
    %c0_i32_0 = arith.constant 0 : i32
    %c0_i32_1 = arith.constant 0 : i32
    return %c0_i32, %c0_i32_0 : i32, i32
  }
  func.func @transform_3(%arg0: i32) -> (i32, i32) {
    %c0_i32 = arith.constant 0 : i32
    %c0_i32_0 = arith.constant 0 : i32
    %c0_i32_1 = arith.constant 0 : i32
    return %c0_i32, %c0_i32_0 : i32, i32
  }
  func.func @transform_4(%arg0: i32) -> (i32, i32) {
    %c0_i32 = arith.constant 0 : i32
    %c0_i32_0 = arith.constant 0 : i32
    %c0_i32_1 = arith.constant 0 : i32
    return %c0_i32, %c0_i32_0 : i32, i32
  }
  func.func @transform_5(%arg0: i32) -> (i32, i32) {
    %c0_i32 = arith.constant 0 : i32
    %c0_i32_0 = arith.constant 0 : i32
    return %c0_i32, %arg0 : i32, i32
  }
}

</mosaic_0001>

<bundles_post_ra>
// kernel: tpu_custom_call.1
= control target key start
LH: loop header
LB: loop body
LE: loop exit
PB: predicated region body
PF: predicated region fallthrough
CT: control target
= control target key end

     0   :  { %s1178_s0 = inlined_call_operand.vmem [shape: f32[512,32], index: 0, kind: input, shape index: {}]   ;;  %s1179_s1 = inlined_call_operand.vmem [shape: f32[16,32], index: 1, kind: input, shape index: {}]   ;;  %s1180_s2 = inlined_call_operand.vmem [shape: f32[16,1], index: 2, kind: input, shape index: {}]   ;;  %s1181_s3 = inlined_call_operand.vmem [shape: f32[1,16], index: 3, kind: input, shape index: {}]   ;;  %s1182_s4 = inlined_call_operand.<no memory space> [shape: f32[1,1], index: 4, kind: input, shape index: {}]   ;;  %s1183_s5 = inlined_call_operand.hbm [shape: f32[1,512], index: 5, kind: output, shape index: {}]  }
   0x1   :  { %v10_v0 = vstv %s1182_s4 }
   0x2   :  { %11 = vst [vmem:[#allocation2] sm:$0x1] %v10_v0 }
   0x3   :  { %v56_v1 = vld [vmem:[%s1178_s0 + $0xf8] sm:$0xff]  ;;  %vm101_vm0 = vcmask 261120   ;;  %v55_v5 = vld [vmem:[%s1178_s0 + $0xf0] sm:$0xff]  ;;  %v54_v9 = vld [vmem:[%s1178_s0 + $0xe8] sm:$0xff]  ;;  %v853_v11 = vmov 0  }
   0x4   :  { %v88_v2 = vld [vmem:[%s1178_s0 + $0x1f8] sm:$0xff]  ;;  %737 = vmatprep.subr.msk.mxu0 %vm101_vm0, %v56_v1  ;;  %v87_v6 = vld [vmem:[%s1178_s0 + $0x1f0] sm:$0xff]  ;;  %v86_v10 = vld [vmem:[%s1178_s0 + $0x1e8] sm:$0xff]  ;;  %813 = vset.pattern.permute.xlu0 %v853_v11 }
   0x5   :  { %v40_v3 = vld [vmem:[%s1178_s0 + $0x78] sm:$0xff]  ;;  %773 = vmatprep.subr.msk.mxu1 %vm101_vm0, %v88_v2  ;;  %v39_v7 = vld [vmem:[%s1178_s0 + $0x70] sm:$0xff]  ;;  %814 = vset.pattern.permute.xlu1 %v853_v11  ;;  %v38_v12 = vld [vmem:[%s1178_s0 + $0x68] sm:$0xff] }
   0x6   :  { %v72_v4 = vld [vmem:[%s1178_s0 + $0x178] sm:$0xff]  ;;  %738 = vmatpush3.xpose.msk.msra.mxu0 %vm101_vm0, %v40_v3  ;;  %v71_v8 = vld [vmem:[%s1178_s0 + $0x170] sm:$0xff]  ;;  %v70_v13 = vld [vmem:[%s1178_s0 + $0x168] sm:$0xff] }
   0x7   :  { %774 = vmatpush3.xpose.msk.msra.mxu1 %vm101_vm0, %v72_v4  ;;  %739 = vmatprep.subr.msk.mxu0 %vm101_vm0, %v55_v5  ;;  %v53_v14 = vld [vmem:[%s1178_s0 + $0xe0] sm:$0xff]  ;;  %v52_v18 = vld [vmem:[%s1178_s0 + $0xd8] sm:$0xff]  ;;  %v51_v22 = vld [vmem:[%s1178_s0 + $0xd0] sm:$0xff] }
   0x8   :  { %775 = vmatprep.subr.msk.mxu1 %vm101_vm0, %v87_v6  ;;  %v85_v15 = vld [vmem:[%s1178_s0 + $0x1e0] sm:$0xff]  ;;  %v84_v19 = vld [vmem:[%s1178_s0 + $0x1d8] sm:$0xff]  ;;  %v83_v23 = vld [vmem:[%s1178_s0 + $0x1d0] sm:$0xff] }
   0x9   :  { %v37_v16 = vld [vmem:[%s1178_s0 + $0x60] sm:$0xff]  ;;  %v36_v20 = vld [vmem:[%s1178_s0 + $0x58] sm:$0xff]  ;;  %v35_v24 = vld [vmem:[%s1178_s0 + $0x50] sm:$0xff] }
   0xa   :  { %740 = vmatpush3.xpose.msk.msra.mxu0 %vm101_vm0, %v39_v7  ;;  %v69_v17 = vld [vmem:[%s1178_s0 + $0x160] sm:$0xff]  ;;  %v68_v21 = vld [vmem:[%s1178_s0 + $0x158] sm:$0xff]  ;;  %v67_v25 = vld [vmem:[%s1178_s0 + $0x150] sm:$0xff] }
   0xb   :  { %776 = vmatpush3.xpose.msk.msra.mxu1 %vm101_vm0, %v71_v8  ;;  %741 = vmatprep.subr.msk.mxu0 %vm101_vm0, %v54_v9  ;;  %v50_v26 = vld [vmem:[%s1178_s0 + $0xc8] sm:$0xff]  ;;  %v993_v28 = vld [vmem:[%s1179_s1] sm:$0xff] }
   0xc   :  { %777 = vmatprep.subr.msk.mxu1 %vm101_vm0, %v86_v10  ;;  %v82_v27 = vld [vmem:[%s1178_s0 + $0x1c8] sm:$0xff] }
   0xd   :  { %v90_v29 = vld [vmem:[%s1180_s2 + $0x8] sm:$0xff] }
   0xe   :  { %742 = vmatpush3.xpose.msk.msra.mxu0 %vm101_vm0, %v38_v12 }
   0xf   :  { %778 = vmatpush3.xpose.msk.msra.mxu1 %vm101_vm0, %v70_v13  ;;  %743 = vmatprep.subr.msk.mxu0 %vm101_vm0, %v53_v14 }
  0x10   :  { %779 = vmatprep.subr.msk.mxu1 %vm101_vm0, %v85_v15 }
  0x12   :  { %744 = vmatpush3.xpose.msk.msra.mxu0 %vm101_vm0, %v37_v16 }
  0x13   :  { %780 = vmatpush3.xpose.msk.msra.mxu1 %vm101_vm0, %v69_v17  ;;  %745 = vmatprep.subr.msk.mxu0 %vm101_vm0, %v52_v18 }
  0x14   :  { %781 = vmatprep.subr.msk.mxu1 %vm101_vm0, %v84_v19 }
  0x16   :  { %746 = vmatpush3.xpose.msk.msra.mxu0 %vm101_vm0, %v36_v20 }
  0x17   :  { %782 = vmatpush3.xpose.msk.msra.mxu1 %vm101_vm0, %v68_v21  ;;  %747 = vmatprep.subr.msk.mxu0 %vm101_vm0, %v51_v22 }
  0x18   :  { %783 = vmatprep.subr.msk.mxu1 %vm101_vm0, %v83_v23 }
  0x1a   :  { %748 = vmatpush3.xpose.msk.msra.mxu0 %vm101_vm0, %v35_v24 }
  0x1b   :  { %784 = vmatpush3.xpose.msk.msra.mxu1 %vm101_vm0, %v67_v25 }
  0x1c   :  { %12 = vsyncpa [#allocation4], 0  ;;  %749 = vmatprep.subr.msk.mxu0 %vm101_vm0, %v50_v26  ;;  %785 = vmatprep.subr.msk.mxu1 %vm101_vm0, %v82_v27  ;;  %v34_v30 = vld [vmem:[%s1178_s0 + $0x48] sm:$0xff]  ;;  %v49_v32 = vld [vmem:[%s1178_s0 + $0xc0] sm:$0xff]  ;;  %v854_v6 = vmov 0.0   ;;  %vm473_vm1 = vcmask 130048  }
  0x1d   :  { %v66_v31 = vld [vmem:[%s1178_s0 + $0x148] sm:$0xff]  ;;  %v81_v33 = vld [vmem:[%s1178_s0 + $0x1c0] sm:$0xff]  ;;  %769 = vmatprep.mubr.msk.f32.mxu0 %vm101_vm0, %v993_v28  ;;  %805 = vmatprep.mubr.msk.f32.mxu1 %vm101_vm0, %v993_v28  ;;  %v48_v37 = vld [vmem:[%s1178_s0 + $0xb8] sm:$0xff] }
  0x1e   :  { %98 = vperm.xlu0 %813, %v90_v29   ;;  %750 = vmatpush3.xpose.msk.msra.mxu0 %vm101_vm0, %v34_v30  ;;  %v89_v34 = vld [vmem:[%s1180_s2] sm:$0xff]  ;;  %v80_v38 = vld [vmem:[%s1178_s0 + $0x1b8] sm:$0xff]  ;;  %v47_v41 = vld [vmem:[%s1178_s0 + $0xb0] sm:$0xff] }
  0x1f   :  { %786 = vmatpush3.xpose.msk.msra.mxu1 %vm101_vm0, %v66_v31  ;;  %751 = vmatprep.subr.msk.mxu0 %vm101_vm0, %v49_v32  ;;  %v33_v35 = vld [vmem:[%s1178_s0 + $0x40] sm:$0xff]  ;;  %v32_v39 = vld [vmem:[%s1178_s0 + $0x38] sm:$0xff]  ;;  %v79_v42 = vld [vmem:[%s1178_s0 + $0x1b0] sm:$0xff] }
  0x20   :  { %787 = vmatprep.subr.msk.mxu1 %vm101_vm0, %v81_v33  ;;  %v65_v36 = vld [vmem:[%s1178_s0 + $0x140] sm:$0xff]  ;;  %v64_v40 = vld [vmem:[%s1178_s0 + $0x138] sm:$0xff]  ;;  %v31_v43 = vld [vmem:[%s1178_s0 + $0x30] sm:$0xff] }
  0x21   :  { %v63_v44 = vld [vmem:[%s1178_s0 + $0x130] sm:$0xff]  ;;  %v46_v45 = vld [vmem:[%s1178_s0 + $0xa8] sm:$0xff]  ;;  %v45_v49 = vld [vmem:[%s1178_s0 + $0xa0] sm:$0xff] }
  0x22   :  { %93 = vperm.xlu0 %813, %v89_v34   ;;  %752 = vmatpush3.xpose.msk.msra.mxu0 %vm101_vm0, %v33_v35  ;;  %v78_v46 = vld [vmem:[%s1178_s0 + $0x1a8] sm:$0xff]  ;;  %v77_v50 = vld [vmem:[%s1178_s0 + $0x1a0] sm:$0xff]  ;;  %v44_v53 = vld [vmem:[%s1178_s0 + $0x98] sm:$0xff]  ;;  %v469_v35 = vlaneseq }
  0x23   :  { %788 = vmatpush3.xpose.msk.msra.mxu1 %vm101_vm0, %v65_v36  ;;  %753 = vmatprep.subr.msk.mxu0 %vm101_vm0, %v48_v37  ;;  %v30_v47 = vld [vmem:[%s1178_s0 + $0x28] sm:$0xff]  ;;  %v29_v51 = vld [vmem:[%s1178_s0 + $0x20] sm:$0xff]  ;;  %v76_v54 = vld [vmem:[%s1178_s0 + $0x198] sm:$0xff] }
  0x24   :  { %789 = vmatprep.subr.msk.mxu1 %vm101_vm0, %v80_v38  ;;  %v62_v48 = vld [vmem:[%s1178_s0 + $0x128] sm:$0xff]  ;;  %v61_v52 = vld [vmem:[%s1178_s0 + $0x120] sm:$0xff]  ;;  %v28_v55 = vld [vmem:[%s1178_s0 + $0x18] sm:$0xff]  ;;  %v470_v36 = vshrl.u32 %v469_v35, 7  ;;  %v855_v38 = vmov 1966171168  }
  0x25   :  { %v60_v56 = vld [vmem:[%s1178_s0 + $0x118] sm:$0xff]  ;;  %v43_v57 = vld [vmem:[%s1178_s0 + $0x90] sm:$0xff]  ;;  %v42_v61 = vld [vmem:[%s1178_s0 + $0x88] sm:$0xff]  ;;  %vm650_vm2 = vcmp.lt.s32.totalorder %v469_v35, 512 }
  0x26   :  { %754 = vmatpush3.xpose.msk.msra.mxu0 %vm101_vm0, %v32_v39  ;;  %v75_v58 = vld [vmem:[%s1178_s0 + $0x190] sm:$0xff]  ;;  %v74_v62 = vld [vmem:[%s1178_s0 + $0x188] sm:$0xff]  ;;  %v41_v1 = vld [vmem:[%s1178_s0 + $0x80] sm:$0xff]  ;;  %v471_v37 = vsub.s32 0, %v470_v36  ;;  %v626_v39 = vunpack.c.l.s4 %v855_v38 }
  0x27   :  { %790 = vmatpush3.xpose.msk.msra.mxu1 %vm101_vm0, %v64_v40  ;;  %755 = vmatprep.subr.msk.mxu0 %vm101_vm0, %v47_v41  ;;  %v27_v59 = vld [vmem:[%s1178_s0 + $0x10] sm:$0xff]  ;;  %v26_v63 = vld [vmem:[%s1178_s0 + $0x8] sm:$0xff]  ;;  %v73_v2 = vld [vmem:[%s1178_s0 + $0x180] sm:$0xff] }
  0x28   :  { %791 = vmatprep.subr.msk.mxu1 %vm101_vm0, %v79_v42  ;;  %v59_v60 = vld [vmem:[%s1178_s0 + $0x110] sm:$0xff]  ;;  %v58_v0 = vld [vmem:[%s1178_s0 + $0x108] sm:$0xff]  ;;  %v25_v3 = vld [vmem:[%s1178_s0] sm:$0xff]  ;;  %v627_v41 = vunpack.c.0.s8 %v626_v39 }
  0x29   :  { %v57_v4 = vld [vmem:[%s1178_s0 + $0x100] sm:$0xff]  ;;  %v24_v5 = vld [vmem:[%s1179_s1 + $0x8] sm:$0xff] }
  0x2a   :  { %756 = vmatpush3.xpose.msk.msra.mxu0 %vm101_vm0, %v31_v43  ;;  %v463_v7 = vld [vmem:[#allocation2] sm:$0x1] }
  0x2b   :  { %792 = vmatpush3.xpose.msk.msra.mxu1 %vm101_vm0, %v63_v44  ;;  %757 = vmatprep.subr.msk.mxu0 %vm101_vm0, %v46_v45  ;;  %v462_v32 = vld [vmem:[%s1181_s3] sm:$0x1]  ;;  %s856_s3 = smov [#allocation3]  }
  0x2c   :  { %793 = vmatprep.subr.msk.mxu1 %vm101_vm0, %v78_v46  ;;  %466 = vperm.xlu1 %814, %v463_v7   ;;  %v630_v46 = vsub.s32 %v627_v41, %v470_v36  ;;  %s659_s23 = sshll.u32 %s856_s3, 4  ;;  %s660_s23 = int_to_ptr.vmem [resolvable:$true] %s659_s23 }
  0x2d   :  { %s831_s24 = scalar_lea.vmem %s660_s23, 64  ;;  %p836_p1 = scmp.lt.s32.totalorder %s660_s23, %s660_s23 }
  0x2e   :  { %758 = vmatpush3.xpose.msk.msra.mxu0 %vm101_vm0, %v30_v47  ;;  %p832_p0 = scmp.ne.s32.totalorder %s660_s23, %s831_s24  ;;  %p837_p2 = scmp.lt.s32.totalorder %s831_s24, %s831_s24 }
  0x2f   :  { %794 = vmatpush3.xpose.msk.msra.mxu1 %vm101_vm0, %v62_v48  ;;  %759 = vmatprep.subr.msk.mxu0 %vm101_vm0, %v45_v49 }
  0x30   :  { %795 = vmatprep.subr.msk.mxu1 %vm101_vm0, %v77_v50  ;;  %p838_p3 = por %p837_p2, %p836_p1 }
  0x32   :  { %760 = vmatpush3.xpose.msk.msra.mxu0 %vm101_vm0, %v29_v51  ;;  %p839_p4 = pnand %p838_p3, %p832_p0 }
  0x33   :  { %796 = vmatpush3.xpose.msk.msra.mxu1 %vm101_vm0, %v61_v52  ;;  %761 = vmatprep.subr.msk.mxu0 %vm101_vm0, %v44_v53 }
  0x34   :  { %797 = vmatprep.subr.msk.mxu1 %vm101_vm0, %v76_v54 }
  0x36   :  { %762 = vmatpush3.xpose.msk.msra.mxu0 %vm101_vm0, %v28_v55 }
  0x37   :  { %798 = vmatpush3.xpose.msk.msra.mxu1 %vm101_vm0, %v60_v56  ;;  %763 = vmatprep.subr.msk.mxu0 %vm101_vm0, %v43_v57 }
  0x38   :  { %799 = vmatprep.subr.msk.mxu1 %vm101_vm0, %v75_v58 }
  0x3a   :  { %764 = vmatpush3.xpose.msk.msra.mxu0 %vm101_vm0, %v27_v59 }
  0x3b   :  { %800 = vmatpush3.xpose.msk.msra.mxu1 %vm101_vm0, %v59_v60  ;;  %765 = vmatprep.subr.msk.mxu0 %vm101_vm0, %v42_v61 }
  0x3c   :  { %801 = vmatprep.subr.msk.mxu1 %vm101_vm0, %v74_v62 }
  0x3e   :  { %766 = vmatpush3.xpose.msk.msra.mxu0 %vm101_vm0, %v26_v63 }
  0x3f   :  { %802 = vmatpush3.xpose.msk.msra.mxu1 %vm101_vm0, %v58_v0  ;;  %767 = vmatprep.subr.msk.mxu0 %vm101_vm0, %v41_v1 }
  0x40   :  { %803 = vmatprep.subr.msk.mxu1 %vm101_vm0, %v73_v2 }
  0x42   :  { %768 = vmatpush3.xpose.msk.msra.mxu0 %vm101_vm0, %v25_v3 }
  0x43   :  { %804 = vmatpush3.xpose.msk.msra.mxu1 %vm101_vm0, %v57_v4 }
  0x45   :  { %770 = vmatmul.mubr.msk.f32.vlgmr.msra.gmra.mxu0 %vm101_vm0, %v993_v28 }
  0x46   :  { %806 = vmatmul.mubr.msk.f32.vlgmr.msra.gmra.mxu1 %vm101_vm0, %v993_v28  ;;  %771 = vmatprep.mubr.msk.f32.mxu0 %vm101_vm0, %v24_v5 }
  0x47   :  { %807 = vmatprep.mubr.msk.f32.mxu1 %vm101_vm0, %v24_v5 }
  0x49   :  { %772 = vmatmul.mubr.msk.f32.gmra.mxu0 %vm101_vm0, %v24_v5 }
  0x4a   :  { %808 = vmatmul.mubr.msk.f32.gmra.mxu1 %vm101_vm0, %v24_v5  ;;  %541 = vmatprep.mubr.f32.mxu0 %v854_v6 }
  0x4b   :  { %612 = vmatprep.mubr.f32.mxu1 %v854_v6 }
  0x99   :  { %v99_v8 = vpop.permute.xlu0 %98 }
  0x9d   :  { %v94_v9 = vpop.permute.xlu0 %93 }
  0xa7   :  { %v467_v40 = vpop.permute.xlu1 %466 }
  0xa8   :  { %v472_v42 = vrot.slane %v467_v40, %v471_v37 }
 0x105   :  { %v366_v10 = vpop.f32.mrf.mxu0 }
 0x106   :  { %v443_v11 = vpop.f32.mrf.mxu1  ;;  %v367_v12 = vadd.f32 %v366_v10, %v94_v9 }
 0x107   :  { %v368_v13 = vpop.f32.mrf.mxu0  ;;  %v444_v25 = vadd.f32 %v443_v11, %v94_v9 }
 0x108   :  { %v445_v14 = vpop.f32.mrf.mxu1  ;;  %v369_v15 = vadd.f32 %v368_v13, %v94_v9  ;;  %815 = vtanh.f32 %v367_v12 }
 0x109   :  { %v372_v16 = vpop.f32.mrf.mxu0  ;;  %v446_v24 = vadd.f32 %v445_v14, %v94_v9 }
 0x10a   :  { %v449_v17 = vpop.f32.mrf.mxu1  ;;  %v373_v18 = vadd.f32 %v372_v16, %v99_v8  ;;  %817 = vtanh.f32 %v369_v15 }
 0x10b   :  { %v374_v19 = vpop.f32.mrf.mxu0  ;;  %v450_v21 = vadd.f32 %v449_v17, %v99_v8 }
 0x10c   :  { %v451_v20 = vpop.f32.mrf.mxu1  ;;  %v375_v22 = vadd.f32 %v374_v19, %v99_v8  ;;  %819 = vtanh.f32 %v373_v18 }
 0x10d   :  { %v452_v23 = vadd.f32 %v451_v20, %v99_v8 }
 0x10e   :  { %821 = vtanh.f32 %v375_v22 }
 0x10f   :  { %823 = vtanh.f32 %v452_v23 }
 0x110   :  { %825 = vtanh.f32 %v450_v21 }
 0x111   :  { %827 = vtanh.f32 %v446_v24 }
 0x112   :  { %829 = vtanh.f32 %v444_v25 }
 0x115   :  { %v816_v26 = vpop.eup %815 }
 0x117   :  { %v818_v27 = vpop.eup %817 }
 0x119   :  { %v820_v28 = vpop.eup %819 }
 0x11b   :  { %v822_v29 = vpop.eup %821 }
 0x11c   :  { %v824_v30 = vpop.eup %823  ;;  %505 = vmatprep.subr.mxu0 %v822_v29 }
 0x11d   :  { %v826_v31 = vpop.eup %825  ;;  %576 = vmatprep.subr.mxu1 %v824_v30  ;;  %506 = vmatpush1.msra.mxu0 %v820_v28 }
 0x11e   :  { %v828_v33 = vpop.eup %827  ;;  %577 = vmatpush1.msra.mxu1 %v826_v31  ;;  %507 = vmatprep.subr.mxu0 %v818_v27 }
 0x11f   :  { %v830_v34 = vpop.eup %829  ;;  %578 = vmatprep.subr.mxu1 %v828_v33  ;;  %508 = vmatpush1.msra.mxu0 %v816_v26 }
 0x120   :  { %579 = vmatpush1.msra.mxu1 %v830_v34  ;;  %735 = vmatmul.mubr.msk.f32.vlgmr.msra.gmra.mxu0 %vm473_vm1, %v462_v32 }
 0x121   :  { %736 = vmatmul.mubr.msk.f32.vlgmr.msra.gmra.mxu1 %vm473_vm1, %v462_v32 }
 0x1e0   :  { %v543_v43 = vpop.f32.mrf.mxu0 }
 0x1e1   :  { %v614_v44 = vpop.f32.mrf.mxu1  ;;  %v544_v47 = vadd.f32 %v543_v43, %v472_v42 }
 0x1e2   :  { %v545_v45 = vpop.f32.mrf.mxu0  ;;  %v615_v50 = vadd.f32 %v614_v44, %v472_v42 }
 0x1e3   :  { %v546_v48 = vadd.f32 %v545_v45, %v472_v42  ;;  %v616_v49 = vpop.f32.mrf.mxu1 }
 0x1e4   :  { %v617_v51 = vadd.f32 %v616_v49, %v472_v42 }
 0x1e5   :  { %v623_v52 = vcombine.low %v544_v47, %v546_v48 }
 0x1e6   :  { %v624_v53 = vcombine.low %v615_v50, %v617_v51 }
 0x1e7   :  { %v631_v54 = vrot.slane %v623_v52, %v630_v46 }
 0x1e8   :  { %v638_v55 = vrot.slane %v624_v53, %v630_v46 }
 0x1ea   :  { %v639_v56 = vcombine.low %v631_v54, %v638_v55 }
 0x1ec   :  { %v646_v57 = vrot.slane %v639_v56, %v630_v46 }
 0x1ee   :  { %652 = vst.msk [vmem:[#allocation3] sm:$0xf] %vm650_vm2, %v646_v57 }
 0x1ef   :  { %842 = shalt.err (!%p839_p4)
}
 0x1f0   :  { %662 = dma.vmem_to_hbm [thread:$0]  %s660_s23, 64, %s1183_s5, [#allocation4]  }
 0x1f1   :  { %851 = dma.done.wait [#allocation4], 64  }
 0x1f2   :  { %852 = vsyncadd [#allocation4], 4294967232 }
 0x1f3   :  { %666 = vsyncpa [#allocation4], 1 }

</bundles_post_ra>
